<compile_context>
chip_gen: v6e
topology: v6e:2x2x1
jax: 0.10.0
libtpu: 0.0.40
codegen_flags: <defaults>
</compile_context>

<pallas_src>
import functools

import jax
import jax.numpy as jnp
from jax.experimental import pallas as pl
from jax.experimental.pallas import tpu as pltpu


# ---------------------------------------------------------------------------
# Kernel 1: hoisted fc matmul  z = h @ W_fc^T   (tiled over src-node rows)
# ---------------------------------------------------------------------------
def fc_kernel(h_ref, wt_ref, z_ref):
    z_ref[...] = jnp.dot(h_ref[...], wt_ref[...],
                         preferred_element_type=jnp.float32)


def fc_forward(h, wt, *, row_tile=128):
    n_src, in_dim = h.shape
    out_dim = wt.shape[1]
    n_pad = pl.cdiv(n_src, row_tile) * row_tile
    if n_pad != n_src:
        h = jnp.pad(h, ((0, n_pad - n_src), (0, 0)))
    z = pl.pallas_call(
        fc_kernel,
        out_shape=jax.ShapeDtypeStruct((n_pad, out_dim), jnp.float32),
        grid=(n_pad // row_tile,),
        in_specs=[
            pl.BlockSpec((row_tile, in_dim), lambda i: (i, 0)),
            pl.BlockSpec((in_dim, out_dim), lambda i: (0, 0)),
        ],
        out_specs=pl.BlockSpec((row_tile, out_dim), lambda i: (i, 0)),
        compiler_params=pltpu.CompilerParams(
            dimension_semantics=("parallel",)),
    )(h, wt)
    return z[:n_src]


# ---------------------------------------------------------------------------
# Kernel 2: masked-softmax attention + aggregation (flash-style, tiled)
#   grid = (dst_tiles [parallel], src_tiles [arbitrary/reduction])
# ---------------------------------------------------------------------------
def gat_attn_kernel(s_dst_ref, s_src_ref, z_ref, adj_ref, zdst_ref, out_ref,
                    m_scr, l_scr, acc_scr,
                    *, use_residual: bool, negative_slope: float):
    j = pl.program_id(1)

    @pl.when(j == 0)
    def _init():
        m_scr[...] = jnp.full_like(m_scr, -jnp.inf)
        l_scr[...] = jnp.zeros_like(l_scr)
        acc_scr[...] = jnp.zeros_like(acc_scr)

    # Edge logits for this (dst-tile, src-tile) block: e[v,u] = s_dst[v] + s_src[u]
    e = s_dst_ref[...] + s_src_ref[...]                       # [TD, TS] f32
    # Fused leaky_relu + adjacency mask (single select pass).
    e = jnp.where(adj_ref[...] > 0,
                  jnp.where(e > 0, e, negative_slope * e),
                  -1e30)

    # Online (flash-style) softmax update; masked lanes give exp(-1e30 - m) == 0.
    m_prev = m_scr[...]
    m_new = jnp.maximum(m_prev, jnp.max(e, axis=-1, keepdims=True))
    corr = jnp.exp(m_prev - m_new)                            # [TD, 1]
    p = jnp.exp(e - m_new)                                    # [TD, TS] f32
    l_scr[...] = corr * l_scr[...] + jnp.sum(p, axis=-1, keepdims=True)
    acc_scr[...] = corr * acc_scr[...] + jnp.dot(
        p.astype(z_ref.dtype), z_ref[...],
        preferred_element_type=jnp.float32)                   # [TD, D] f32
    m_scr[...] = m_new

    @pl.when(j == pl.num_programs(1) - 1)
    def _finalize():
        denom = jnp.maximum(l_scr[...], 1e-30)                # isolated-node guard
        out = acc_scr[...] * pl.reciprocal(denom, approx=True)
        if use_residual:
            out = out + zdst_ref[...]
        out_ref[...] = out.astype(out_ref.dtype)


def gat_layer_forward(h, wf_t, a_src, a_dst, indices, adj,
                      use_residual=False, *, dst_tile=64, src_tile=128,
                      negative_slope=0.01):
    n_src = h.shape[0]
    n_dst = indices.shape[0]
    out_dim = wf_t.shape[1]

    # (1) hoisted fc matmul (own tiled pallas_call; not recomputed per tile).
    z = fc_forward(h, wf_t)                                   # [Ns, D] f32

    # (2) fused attention-score projection + O(N) gathers replacing the
    #     one-hot `sel @ z` matmul.
    a_cat = jnp.concatenate([a_src, a_dst], axis=1)           # [D, 2]
    s = z @ a_cat                                             # [Ns, 2]  (tiny)
    s_src = s[:, 0][None, :]                                  # [1, Ns]
    s_dst = jnp.take(s[:, 1], indices, axis=0)[:, None]       # [Nd, 1]
    z_dst = jnp.take(z, indices, axis=0)                      # [Nd, D]  (residual)

    # (3) pad to tile multiples (padded src columns are masked by adj == 0).
    n_dst_p = pl.cdiv(n_dst, dst_tile) * dst_tile
    n_src_p = pl.cdiv(n_src, src_tile) * src_tile
    pd, ps = n_dst_p - n_dst, n_src_p - n_src
    s_dst_p = jnp.pad(s_dst, ((0, pd), (0, 0)))
    s_src_p = jnp.pad(s_src, ((0, 0), (0, ps)))
    z_bf16 = jnp.pad(z, ((0, ps), (0, 0))).astype(jnp.bfloat16)
    adj_i8 = jnp.pad(adj.astype(jnp.int8), ((0, pd), (0, ps)))
    z_dst_p = jnp.pad(z_dst, ((0, pd), (0, 0)))

    kernel = functools.partial(gat_attn_kernel,
                               use_residual=use_residual,
                               negative_slope=negative_slope)
    out = pl.pallas_call(
        kernel,
        out_shape=jax.ShapeDtypeStruct((n_dst_p, out_dim), jnp.float32),
        grid=(n_dst_p // dst_tile, n_src_p // src_tile),
        in_specs=[
            pl.BlockSpec((dst_tile, 1), lambda i, j: (i, 0)),        # s_dst  f32
            pl.BlockSpec((1, src_tile), lambda i, j: (0, j)),        # s_src  f32
            pl.BlockSpec((src_tile, out_dim), lambda i, j: (j, 0)),  # z      bf16
            pl.BlockSpec((dst_tile, src_tile), lambda i, j: (i, j)), # adj    int8
            pl.BlockSpec((dst_tile, out_dim), lambda i, j: (i, 0)),  # z_dst  f32
        ],
        out_specs=pl.BlockSpec((dst_tile, out_dim), lambda i, j: (i, 0)),
        scratch_shapes=[
            pltpu.VMEM((dst_tile, 1), jnp.float32),        # running max  m
            pltpu.VMEM((dst_tile, 1), jnp.float32),        # running sum  l
            pltpu.VMEM((dst_tile, out_dim), jnp.float32),  # accumulator
        ],
        compiler_params=pltpu.CompilerParams(
            dimension_semantics=("parallel", "arbitrary"),
            vmem_limit_bytes=32 * 1024 * 1024),
    )(s_dst_p, s_src_p, z_bf16, adj_i8, z_dst_p)
    return out[:n_dst]


# ---------------------------------------------------------------------------
# Pure-JAX reference (f32 everywhere)
# ---------------------------------------------------------------------------
def reference_forward(h, wf_t, a_src, a_dst, indices, adj, use_residual=False):
    z = h @ wf_t
    z_dst = z[indices]
    e = z_dst @ a_dst + (z @ a_src).T
    e = jnp.where(e > 0, e, 0.01 * e)
    e = jnp.where(adj > 0, e, -1e30)
    alpha = jax.nn.softmax(e, axis=-1)
    out = alpha @ z
    if use_residual:
        out = out + z_dst
    return out


if __name__ == "__main__":
    # Small synthetic "NodeFlow block": N_src source nodes, N_dst dst nodes.
    N_SRC, N_DST = 256, 128
    IN_DIM, OUT_DIM = 64, 128          # OUT_DIM = 128 -> lane-dense output
    USE_RESIDUAL = True

    key = jax.random.PRNGKey(0)
    k_h, k_fc, k_attn, k_adj = jax.random.split(key, 4)

    # Input node features h (src layer).
    h = jax.random.normal(k_h, (N_SRC, IN_DIM), dtype=jnp.float32)

    # Deterministic xavier_normal_ init with gain = calculate_gain('relu') = sqrt(2).
    gain = jnp.sqrt(2.0)
    fc_std = gain * jnp.sqrt(2.0 / (IN_DIM + OUT_DIM))
    fc_w = fc_std * jax.random.normal(k_fc, (OUT_DIM, IN_DIM), dtype=jnp.float32)
    attn_std = gain * jnp.sqrt(2.0 / (2 * OUT_DIM + 1))
    attn_w = attn_std * jax.random.normal(k_attn, (1, 2 * OUT_DIM), dtype=jnp.float32)

    wf_t = fc_w.T                                       # [in_dim, out_dim]
    a_src = attn_w[0, :OUT_DIM].reshape(OUT_DIM, 1)     # applies to src z
    a_dst = attn_w[0, OUT_DIM:].reshape(OUT_DIM, 1)     # applies to dst z

    # indices: position of each dst-layer node inside the src layer
    # (what torch.topk((A == B).int(), 1, 0) computes in the original code).
    indices = (jnp.arange(N_DST, dtype=jnp.int32) * 2) % N_SRC

    # Block adjacency (int8): adj[v, u] = 1 if edge u -> v. Guarantee each dst
    # node has at least one incoming edge (its own src copy), matching a valid
    # NodeFlow block where every dst node receives messages.
    rand_adj = jax.random.uniform(k_adj, (N_DST, N_SRC)) < 0.3
    self_edge = jax.nn.one_hot(indices, N_SRC, dtype=jnp.float32) > 0
    adj = jnp.logical_or(rand_adj, self_edge).astype(jnp.int8)

    out = gat_layer_forward(h, wf_t, a_src, a_dst, indices, adj,
                            use_residual=USE_RESIDUAL)
    out = jax.block_until_ready(out)

    ref = reference_forward(h, wf_t, a_src, a_dst, indices, adj,
                            use_residual=USE_RESIDUAL)
    # bf16 aggregation operands + approx reciprocal => slightly loosened tol.
    if not jnp.allclose(out, ref, atol=5e-2, rtol=5e-2):
        max_err = jnp.max(jnp.abs(out - ref))
        raise AssertionError(f"Pallas kernel output mismatch (max err {max_err})")

    print("KERNEL_OK")
</pallas_src>

<mosaic_0001>
module attributes {stable_mosaic.version = 11 : i64} {
  func.func @fc_kernel(%arg0: i32, %arg1: memref<128x64xf32, #tpu.memory_space<vmem>>, %arg2: memref<64x128xf32, #tpu.memory_space<vmem>>, %arg3: memref<128x128xf32, #tpu.memory_space<vmem>>) attributes {dimension_semantics = [#tpu.dimension_semantics<parallel>], iteration_bounds = array<i64: 2>, scalar_prefetch = 0 : i64, scratch_operands = 0 : i64, tpu.core_type = #tpu.core_type<tc>, window_params = [{transform_indices = @transform_0, window_bounds = array<i64: 128, 64>}, {pipeline_mode = #tpu.pipeline_mode<synchronous>, transform_indices = @transform_1, window_bounds = array<i64: 64, 128>}, {transform_indices = @transform_2, window_bounds = array<i64: 128, 128>}]} {
    %c0 = arith.constant 0 : index
    %c0_0 = arith.constant 0 : index
    %0 = vector.load %arg1[%c0, %c0_0] : memref<128x64xf32, #tpu.memory_space<vmem>>, vector<128x64xf32>
    %c0_1 = arith.constant 0 : index
    %c0_2 = arith.constant 0 : index
    %1 = vector.load %arg2[%c0_1, %c0_2] : memref<64x128xf32, #tpu.memory_space<vmem>>, vector<64x128xf32>
    %cst = arith.constant dense<0.000000e+00> : vector<128x128xf32>
    %2 = tpu.matmul %0, %1, %cst {dimension_numbers = #tpu.dot_dimension_numbers<[1], [0], [0], [1], [0, 0, 1, 1], [], []>} : vector<128x64xf32>, vector<64x128xf32>, vector<128x128xf32> -> vector<128x128xf32>
    %c0_3 = arith.constant 0 : index
    %c0_4 = arith.constant 0 : index
    %3 = vector.load %arg3[%c0_3, %c0_4] : memref<128x128xf32, #tpu.memory_space<vmem>>, vector<128x128xf32>
    tpu.vector_store %arg3[%c0_3, %c0_4], %2 {strides = array<i32>} : memref<128x128xf32, #tpu.memory_space<vmem>>, vector<128x128xf32>,
    return
  }
  func.func @transform_0(%arg0: i32) -> (i32, i32) {
    %c0_i32 = arith.constant 0 : i32
    %c0_i32_0 = arith.constant 0 : i32
    return %arg0, %c0_i32 : i32, i32
  }
  func.func @transform_1(%arg0: i32) -> (i32, i32) {
    %c0_i32 = arith.constant 0 : i32
    %c0_i32_0 = arith.constant 0 : i32
    %c0_i32_1 = arith.constant 0 : i32
    return %c0_i32, %c0_i32_0 : i32, i32
  }
  func.func @transform_2(%arg0: i32) -> (i32, i32) {
    %c0_i32 = arith.constant 0 : i32
    %c0_i32_0 = arith.constant 0 : i32
    return %arg0, %c0_i32 : i32, i32
  }
}

</mosaic_0001>

<bundles_post_ra>
// kernel: tpu_custom_call.1
= control target key start
LH: loop header
LB: loop body
LE: loop exit
PB: predicated region body
PF: predicated region fallthrough
CT: control target
= control target key end

     0   :  { %7 = vsyncpa [#allocation3], 0  ;;  %s867_s0 = inlined_call_operand.vmem [shape: f32[256,64], index: 0, kind: input, shape index: {}]   ;;  %s868_s1 = inlined_call_operand.vmem [shape: f32[64,128], index: 1, kind: input, shape index: {}]   ;;  %s869_s2 = inlined_call_operand.hbm [shape: f32[256,128], index: 2, kind: output, shape index: {}]  }
   0x1   :  { %9 = vsyncpa [#allocation3 + $0x1], 0  ;;  %s685_s9 = smov 0   ;;  %s687_s10 = smov 0  }
   0x2   :  { %s689_s11 = smov 0   ;;  %s691_s12 = smov 0  }
   0x3 LB: > { %s706_s13 = sadd.s32 4294967295, %s665_s12   ;;  %s455_s14 = sadd.s32 4294967294, %s665_s12   ;;  %s665_s12 = sphi %s691_s12, %s875_s12   ;;  %s661_s11 = sphi %s689_s11, %s874_s11   ;;  %s657_s10 = sphi %s687_s10, %s873_s10   ;;  %s653_s9 = sphi %s685_s9, %s872_s9  }
   0x4   : > { %s710_s15 = sadd.s32 1, %s665_s12   ;;  %s69_s16 = sadd.s32 1, %s661_s11 }
   0x5   : > { %s66_s17 = ssub.s32 %s665_s12, %s710_s15  ;;  %p79_p0 = scmp.ne.s32.totalorder %s661_s11, %s657_s10 }
   0x6   : > { %p67_p1 = scmp.eq.s32.totalorder %s66_s17, 0  ;;  %p80_p2 = scmp.eq.s32.totalorder %s706_s13, 1 }
   0x7   : > { %p85_p3 = scmp.ne.s32.totalorder %s657_s10, %s653_s9  ;;  %p86_p4 = scmp.eq.s32.totalorder %s455_s14, 1 }
   0x8   : > { %s721_s18 = scalar_select %p67_p1, %s661_s11, %s69_s16  }
   0x9   : > { %p723_p5 = por %p80_p2, %p79_p0  ;;  %p727_p6 = por %p86_p4, %p85_p3 }
   0xa   : > { %p458_p7 = scmp.ge.s32.totalorder %s665_s12, 1  ;;  %p116_p8 = scmp.lt.s32.totalorder %s665_s12, 3 }
   0xc   : > { %p117_p9 = pnand %p458_p7, %p116_p8 }
   0xd   : > { %s460_s25 = sshll.u32 (!%p117_p9), %s706_s13, 4  ;;  %s135_s23 = sand.u32 (!%p117_p9), 1, %s657_s10  }
   0xe   : > { %120 = sbr.rel (%p117_p9) target bundleno = 258 (0x102), region = 28  ;;  %p139_p10 = scmp.lt.s32.totalorder (!%p117_p9), %s460_s25, 31 }
   0xf   : > { %s459_s24 = sshll.u32 (!%p117_p9), %s135_s23, 7  ;;  %s483_s26 = sshll.u32 (!%p117_p9), %s706_s13, 11 }
  0x10   : > { %s817_s30 = scalar_lea.hbm (!%p117_p9), %s869_s2, %s483_s26  ;;  %s827_s13 = scalar_lea.sflag (!%p117_p9), [#allocation3], %s135_s23 }
  0x11   : > { %s667_s4 = smov (!%p117_p9), [#allocation2]  }
  0x12   : > { %s609_s5 = sshll.u32 (!%p117_p9), %s667_s4, 4  ;;  %s610_s5 = int_to_ptr.vmem [resolvable:$false] %s609_s5 }
  0x13   : > { %v168_v0 = vld [vmem:[%s868_s1 + $0x38] sm:$0xff]  ;;  %v167_v1 = vld [vmem:[%s868_s1 + $0x30] sm:$0xff]  ;;  %v166_v2 = vld [vmem:[%s868_s1 + $0x28] sm:$0xff]  ;;  %s877_s25 = smov (!%p139_p10, %s460_s25), 31  ;;  %vm169_vm0 = vcmask 523264  }
  0x14   : > { %508 = vmatprep.subr.mxu0 %v168_v0  ;;  %548 = vmatprep.subr.mxu1 %v168_v0  ;;  %v165_v3 = vld [vmem:[%s868_s1 + $0x20] sm:$0xff]  ;;  %v164_v4 = vld [vmem:[%s868_s1 + $0x18] sm:$0xff]  ;;  %v163_v5 = vld [vmem:[%s868_s1 + $0x10] sm:$0xff]  ;;  %s461_s6 = sshll.u32 %s877_s25, 3  ;;  %s798_s25 = scalar_lea.vmem [#allocation2], %s459_s24 }
  0x15   : > { %509 = vmatpush3.msra.mxu0 %v168_v0  ;;  %556 = vmatpush3.msra.mxu1 %v168_v0  ;;  %v162_v6 = vld [vmem:[%s868_s1 + $0x8] sm:$0xff]  ;;  %s758_s17 = scalar_lea.vmem %s867_s0, %s461_s6  ;;  %v161_v7 = vld [vmem:[%s868_s1] sm:$0xff]  ;;  %s393_s27 = sshll.u32 %s798_s25, 4  ;;  %s819_s27 = int_to_ptr.vmem [resolvable:$true] %s393_s27 }
  0x16   : > { %510 = vmatprep.subr.mxu0 %v167_v1  ;;  %549 = vmatprep.subr.mxu1 %v167_v1  ;;  %v145_v8 = vld [vmem:[%s758_s17] sm:$0xff]  ;;  %v146_v10 = vld [vmem:[%s758_s17 + $0x8] sm:$0xff]  ;;  %v147_v12 = vld [vmem:[%s758_s17 + $0x10] sm:$0xff]  ;;  %s605_s3 = scalar_lea.vmem %s819_s27, 2048  ;;  %s611_s6 = scalar_lea.vmem %s610_s5, 4096 }
  0x17   : > { %511 = vmatpush3.msra.mxu0 %v167_v1  ;;  %557 = vmatpush3.msra.mxu1 %v167_v1  ;;  %v153_v9 = vld [vmem:[%s758_s17 + $0x40] sm:$0xff]  ;;  %v154_v11 = vld [vmem:[%s758_s17 + $0x48] sm:$0xff]  ;;  %v155_v13 = vld [vmem:[%s758_s17 + $0x50] sm:$0xff]  ;;  %p606_p11 = scmp.ne.s32.totalorder %s819_s27, %s605_s3  ;;  %p612_p0 = scmp.lt.s32.totalorder %s819_s27, %s610_s5 }
  0x18   : > { %512 = vmatprep.subr.mxu0 %v166_v2  ;;  %550 = vmatprep.subr.mxu1 %v166_v2  ;;  %v148_v14 = vld [vmem:[%s758_s17 + $0x18] sm:$0xff]  ;;  %v149_v16 = vld [vmem:[%s758_s17 + $0x20] sm:$0xff]  ;;  %v150_v18 = vld [vmem:[%s758_s17 + $0x28] sm:$0xff]  ;;  %p613_p1 = scmp.lt.s32.totalorder %s611_s6, %s605_s3 }
  0x19   : > { %513 = vmatpush3.msra.mxu0 %v166_v2  ;;  %558 = vmatpush3.msra.mxu1 %v166_v2  ;;  %v156_v15 = vld [vmem:[%s758_s17 + $0x58] sm:$0xff]  ;;  %v157_v17 = vld [vmem:[%s758_s17 + $0x60] sm:$0xff]  ;;  %v158_v19 = vld [vmem:[%s758_s17 + $0x68] sm:$0xff]  ;;  %p607_p12 = pnand %p606_p11, %p723_p5 }
  0x1a   : > { %514 = vmatprep.subr.mxu0 %v165_v3  ;;  %551 = vmatprep.subr.mxu1 %v165_v3  ;;  %v151_v20 = vld [vmem:[%s758_s17 + $0x30] sm:$0xff]  ;;  %v152_v22 = vld [vmem:[%s758_s17 + $0x38] sm:$0xff]  ;;  %p614_p2 = por %p613_p1, %p612_p0 }
  0x1b   : > { %515 = vmatpush3.msra.mxu0 %v165_v3  ;;  %559 = vmatpush3.msra.mxu1 %v165_v3  ;;  %v159_v21 = vld [vmem:[%s758_s17 + $0x70] sm:$0xff]  ;;  %v160_v23 = vld [vmem:[%s758_s17 + $0x78] sm:$0xff]  ;;  %p608_p13 = pneg %p607_p12 }
  0x1c   : > { %516 = vmatprep.subr.mxu0 %v164_v4  ;;  %552 = vmatprep.subr.mxu1 %v164_v4 }
  0x1d   : > { %517 = vmatpush3.msra.mxu0 %v164_v4  ;;  %560 = vmatpush3.msra.mxu1 %v164_v4  ;;  %p615_p3 = pnand %p614_p2, %p608_p13 }
  0x1e   : > { %518 = vmatprep.subr.mxu0 %v163_v5  ;;  %553 = vmatprep.subr.mxu1 %v163_v5 }
  0x1f   : > { %519 = vmatpush3.msra.mxu0 %v163_v5  ;;  %561 = vmatpush3.msra.mxu1 %v163_v5 }
  0x20   : > { %520 = vmatprep.subr.mxu0 %v162_v6  ;;  %554 = vmatprep.subr.mxu1 %v162_v6 }
  0x21   : > { %521 = vmatpush3.msra.mxu0 %v162_v6  ;;  %562 = vmatpush3.msra.mxu1 %v162_v6 }
  0x22   : > { %522 = vmatprep.subr.mxu0 %v161_v7  ;;  %555 = vmatprep.subr.mxu1 %v161_v7 }
  0x23   : > { %523 = vmatpush3.msra.mxu0 %v161_v7  ;;  %563 = vmatpush3.msra.mxu1 %v161_v7 }
  0x24   : > { %524 = vmatprep.mubr.msk.f32.mxu0 %vm169_vm0, %v145_v8  ;;  %536 = vmatprep.mubr.msk.f32.mxu1 %vm169_vm0, %v153_v9 }
  0x25   : > { %525 = vmatmul.mubr.msk.f32.vlgmr.msra.gmra.mxu0 %vm169_vm0, %v146_v10  ;;  %537 = vmatmul.mubr.msk.f32.vlgmr.msra.gmra.mxu1 %vm169_vm0, %v154_v11 }
  0x26   : > { %527 = vmatprep.mubr.msk.f32.mxu0 %vm169_vm0, %v147_v12  ;;  %539 = vmatprep.mubr.msk.f32.mxu1 %vm169_vm0, %v155_v13 }
  0x29   : > { %528 = vmatmul.mubr.msk.f32.gmra.mxu0 %vm169_vm0, %v148_v14  ;;  %540 = vmatmul.mubr.msk.f32.gmra.mxu1 %vm169_vm0, %v156_v15 }
  0x2a   : > { %530 = vmatprep.mubr.msk.f32.mxu0 %vm169_vm0, %v149_v16  ;;  %542 = vmatprep.mubr.msk.f32.mxu1 %vm169_vm0, %v157_v17 }
  0x2d   : > { %531 = vmatmul.mubr.msk.f32.gmra.mxu0 %vm169_vm0, %v150_v18  ;;  %543 = vmatmul.mubr.msk.f32.gmra.mxu1 %vm169_vm0, %v158_v19 }
  0x2e   : > { %533 = vmatprep.mubr.msk.f32.mxu0 %vm169_vm0, %v151_v20  ;;  %545 = vmatprep.mubr.msk.f32.mxu1 %vm169_vm0, %v159_v21 }
  0x31   : > { %534 = vmatmul.mubr.msk.f32.gmra.mxu0 %vm169_vm0, %v152_v22  ;;  %546 = vmatmul.mubr.msk.f32.gmra.mxu1 %vm169_vm0, %v160_v23 }
  0xe5   : > { %v526_v24 = vpop.f32.mrf.mxu0  ;;  %v538_v25 = vpop.f32.mrf.mxu1 }
  0xe6   : > { %364 = vst [vmem:[%s798_s25 + $0x8] sm:$0xff] %v526_v24  ;;  %372 = vst [vmem:[%s798_s25 + $0x48] sm:$0xff] %v538_v25 }
  0xe7   : > { %v284_v26 = vpop.f32.mrf.mxu0  ;;  %v324_v27 = vpop.f32.mrf.mxu1 }
  0xe8   : > { %363 = vst [vmem:[%s798_s25] sm:$0xff] %v284_v26  ;;  %371 = vst [vmem:[%s798_s25 + $0x40] sm:$0xff] %v324_v27 }
  0xe9   : > { %v529_v28 = vpop.f32.mrf.mxu0  ;;  %v541_v29 = vpop.f32.mrf.mxu1 }
  0xea   : > { %366 = vst [vmem:[%s798_s25 + $0x18] sm:$0xff] %v529_v28  ;;  %374 = vst [vmem:[%s798_s25 + $0x58] sm:$0xff] %v541_v29 }
  0xeb   : > { %v294_v30 = vpop.f32.mrf.mxu0  ;;  %v334_v31 = vpop.f32.mrf.mxu1 }
  0xec   : > { %365 = vst [vmem:[%s798_s25 + $0x10] sm:$0xff] %v294_v30  ;;  %373 = vst [vmem:[%s798_s25 + $0x50] sm:$0xff] %v334_v31 }
  0xed   : > { %v532_v32 = vpop.f32.mrf.mxu0  ;;  %v544_v33 = vpop.f32.mrf.mxu1 }
  0xee   : > { %368 = vst [vmem:[%s798_s25 + $0x28] sm:$0xff] %v532_v32  ;;  %376 = vst [vmem:[%s798_s25 + $0x68] sm:$0xff] %v544_v33 }
  0xef   : > { %v304_v34 = vpop.f32.mrf.mxu0  ;;  %v344_v35 = vpop.f32.mrf.mxu1 }
  0xf0   : > { %367 = vst [vmem:[%s798_s25 + $0x20] sm:$0xff] %v304_v34  ;;  %375 = vst [vmem:[%s798_s25 + $0x60] sm:$0xff] %v344_v35 }
  0xf1   : > { %v535_v36 = vpop.f32.mrf.mxu0  ;;  %v547_v37 = vpop.f32.mrf.mxu1 }
  0xf2   : > { %370 = vst [vmem:[%s798_s25 + $0x38] sm:$0xff] %v535_v36  ;;  %378 = vst [vmem:[%s798_s25 + $0x78] sm:$0xff] %v547_v37 }
  0xf3   : > { %v314_v38 = vpop.f32.mrf.mxu0  ;;  %v354_v39 = vpop.f32.mrf.mxu1 }
  0xf4   : > { %369 = vst [vmem:[%s798_s25 + $0x30] sm:$0xff] %v314_v38  ;;  %377 = vst [vmem:[%s798_s25 + $0x70] sm:$0xff] %v354_v39 }
  0xf5   : > { %618 = shalt.err (!%p615_p3)
}
  0xf6   : > { %s619_s7 = scalar_lea.hbm %s817_s30, 2048  ;;  %s623_s16 = scalar_lea.hbm %s869_s2, 4096 }
  0xf7   : > { %p620_p4 = scmp.ne.s32.totalorder %s817_s30, %s619_s7  ;;  %p624_p9 = scmp.lt.s32.totalorder %s817_s30, %s869_s2 }
  0xf8   : > { %p625_p10 = scmp.lt.s32.totalorder %s623_s16, %s619_s7 }
  0xf9   : > { %p621_p7 = pnand %p620_p4, %p723_p5 }
  0xfa   : > { %p626_p11 = por %p625_p10, %p624_p9 }
  0xfb   : > { %p622_p8 = pneg %p621_p7 }
  0xfd   : > { %p627_p12 = pnand %p626_p11, %p622_p8 }
  0xff   : > { %630 = shalt.err (!%p627_p12)
}
 0x100   : > { %s668_s22 = smov 128   ;;  %s669_s23 = smov 8  }
 0x101   : > { %564 = dma.vmem_to_hbm [thread:$0]  (%p723_p5), %s819_s27, 2048, %s817_s30, %s827_s13, %s668_s22, %s668_s22, %s669_s23  }
 0x102 PF: > { %p570_p13 = scmp.ge.s32.totalorder %s665_s12, 2  ;;  %s408_s24 = sand.u32 1, %s653_s9  }
 0x103   : > { %s409_s25 = scalar_lea.sflag [#allocation3], %s408_s24 }
 0x104   : > { %p567_p0 = pnand %p570_p13, %p727_p6 }
 0x106   : > { %p568_p1 = pneg %p567_p0 }
 0x108   : > { %648 = dma.done.wait (%p568_p1), %s409_s25, 2048  }
 0x109   : > { %650 = vsyncadd (%p568_p1), %s409_s25, 4294965248  ;;  %p12_p2 = scmp.ge.s32.totalorder %s710_s15, 4   ;;  %s872_s9 = smov %s657_s10 }
 0x10a   : > { %s873_s10 = smov %s661_s11  ;;  %s874_s11 = smov %s721_s18 }
 0x10b   : > { %s875_s12 = smov %s710_s15  ;;  %14 = sbr.rel (!%p12_p2) target bundleno = 3 (0x3), region = 63 }
 0x110   :  { %414 = vsyncpa [#allocation3], 1 }
 0x111   :  { %416 = vsyncpa [#allocation3 + $0x1], 1 }

</bundles_post_ra>
